<compile_context>
chip_gen: v7x
topology: tpu7x:2x2x1
jax: 0.10.0
libtpu: 0.0.40
codegen_flags: <defaults>
</compile_context>

<pallas_src>
import functools

import numpy as np
import jax
import jax.numpy as jnp
from jax.experimental import pallas as pl
from jax.experimental.pallas import tpu as pltpu

EPS = 1e-5
ACT_DTYPE = jnp.bfloat16           # HBM storage dtype for activations/weights
VMEM_LIMIT = 32 * 1024 * 1024      # fits v5e/v6e/v7x scoped-VMEM budgets


def _round_up(x, m):
    return (x + m - 1) // m * m


# ----------------------------------------------------------------------------
# pltpu.roll direction probe (numpy convention vs. inverse).  Run once,
# eagerly, before tracing the jitted forward.
# ----------------------------------------------------------------------------
_ROLL_NP_LIKE = None


def _roll_probe_kernel(x_ref, o_ref):
    o_ref[...] = pltpu.roll(x_ref[...], 1, 1)


def roll_is_np_like():
    """True iff pltpu.roll(x, s)[i] == x[(i - s) % n] (numpy convention)."""
    global _ROLL_NP_LIKE
    if _ROLL_NP_LIKE is None:
        x = jnp.asarray(np.tile(np.arange(128, dtype=np.float32), (8, 1)))
        y = pl.pallas_call(
            _roll_probe_kernel,
            out_shape=jax.ShapeDtypeStruct((8, 128), jnp.float32),
        )(x)
        y00 = float(jax.device_get(y)[0, 0])
        assert y00 in (127.0, 1.0), f"unexpected pltpu.roll behaviour: {y00}"
        _ROLL_NP_LIKE = (y00 == 127.0)
    return _ROLL_NP_LIKE


# ----------------------------------------------------------------------------
# Small trace-time constants (built with numpy, embedded under jit)
# ----------------------------------------------------------------------------
def _shift_masks(h, w):
    """(9, h*w) 0/1 masks: mask[k, m]=1 iff output pixel m has a valid 3x3
    neighbour for tap k (pad=1 zero padding)."""
    m = np.arange(h * w)
    ho, wo = m // w, m % w
    out = np.zeros((9, h * w), np.float32)
    for k in range(9):
        di, dj = k // 3 - 1, k % 3 - 1
        out[k] = ((ho + di >= 0) & (ho + di < h) &
                  (wo + dj >= 0) & (wo + dj < w))
    return jnp.asarray(out, dtype=ACT_DTYPE)


def _downsample_matrix(h, w):
    """(h*w, ho*wo) 0/1 selection matrix implementing stride-2 subsampling as
    a matmul (keeps the in-kernel downsample on the MXU)."""
    ho_n, wo_n = (h - 1) // 2 + 1, (w - 1) // 2 + 1
    s = np.zeros((h * w, ho_n * wo_n), np.float32)
    for i in range(ho_n):
        for j in range(wo_n):
            s[(2 * i) * w + 2 * j, i * wo_n + j] = 1.0
    return jnp.asarray(s, dtype=ACT_DTYPE)


# ----------------------------------------------------------------------------
# Fused BasicBlock kernel (conv1[+conv2+residual][+GAP+linear head])
# ----------------------------------------------------------------------------
def _make_fused_block_kernel(*, stride, has_conv2, has_sc, with_head,
                             w_in, w_out, m_in, m_out, roll_np_like):
    def conv3x3(src, w_ref, mask_ref, width, m_tot):
        """sum_k W_k @ shift_k(src): 3x3 conv (stride 1) via in-VMEM im2col."""
        acc = None
        for k in range(9):
            di, dj = k // 3 - 1, k % 3 - 1
            if di == 0 and dj == 0:
                tap = src                      # centre tap: no shift, no mask
            else:
                delta = di * width + dj        # flat-index offset of this tap
                shift = ((-delta) % m_tot) if roll_np_like else (delta % m_tot)
                tap = pltpu.roll(src, shift, 1) * mask_ref[pl.ds(k, 1), :]
            part = jnp.dot(w_ref[k], tap, preferred_element_type=jnp.float32)
            acc = part if acc is None else acc + part
        return acc

    def kernel(*refs):
        it = iter(refs)
        x_ref = next(it)
        w1_ref, b1_ref, m1_ref = next(it), next(it), next(it)
        sdown_ref = next(it) if stride != 1 else None
        if has_conv2:
            w2_ref, b2_ref, m2_ref = next(it), next(it), next(it)
        if has_sc:
            wsc_ref, bsc_ref = next(it), next(it)
        if with_head:
            wl_ref, bl_ref = next(it), next(it)
        out_ref = next(it)

        xb = x_ref[0]                                        # (Cin, m_in) bf16
        # conv1 (+ folded BN) evaluated at stride 1, then ReLU (f32).
        h1 = conv3x3(xb, w1_ref, m1_ref, w_in, m_in)
        h1 = jnp.maximum(h1 + b1_ref[...], 0.0)              # (Co, m_in) f32
        if not has_conv2:                                    # stem layer
            out_ref[0] = h1.astype(out_ref.dtype)
            return
        h1 = h1.astype(jnp.bfloat16)
        if stride != 1:                                      # stride-2 select
            h1 = jnp.dot(h1, sdown_ref[...],
                         preferred_element_type=jnp.float32).astype(jnp.bfloat16)
        # conv2 (+ folded BN), stride 1 at the output resolution.
        acc2 = conv3x3(h1, w2_ref, m2_ref, w_out, m_out) + b2_ref[...]
        # residual path (identity or folded-BN 1x1 conv, reusing in-VMEM xb).
        if has_sc:
            xs = xb if stride == 1 else jnp.dot(
                xb, sdown_ref[...],
                preferred_element_type=jnp.float32).astype(jnp.bfloat16)
            res = jnp.dot(wsc_ref[...], xs,
                          preferred_element_type=jnp.float32) + bsc_ref[...]
        else:
            res = xb.astype(jnp.float32)
        o2 = jnp.maximum(acc2 + res, 0.0)                    # (Co, m_out) f32
        if with_head:   # fused global-average-pool + linear classifier (f32)
            pooled = jnp.sum(o2, axis=1, keepdims=True) * (1.0 / m_out)
            logits = jnp.dot(wl_ref[...], pooled,
                             preferred_element_type=jnp.float32) + bl_ref[...]
            out_ref[:, pl.ds(pl.program_id(0), 1)] = logits  # write this column
        else:
            out_ref[0] = o2.astype(out_ref.dtype)

    return kernel


def fused_block(x, *, w1, b1, h, w, stride=1, w2=None, b2=None,
                wsc=None, bsc=None, wl=None, bl=None):
    """One pallas_call: conv3x3+BN+ReLU [-> conv3x3+BN + residual + ReLU]
    [-> global-avg-pool + linear].  Grid = batch (one image per grid step)."""
    n, cin, m_in = x.shape
    co = w1.shape[1]
    ho = (h - 1) // stride + 1
    wo = (w - 1) // stride + 1
    m_out = ho * wo
    has_conv2 = w2 is not None
    has_sc = wsc is not None
    with_head = wl is not None
    if has_conv2 and not has_sc:
        assert stride == 1 and cin == co, "identity shortcut needs same shape"

    def full(*shape):
        return pl.BlockSpec(shape, lambda i, _s=len(shape): (0,) * _s)

    inputs = [x, w1, b1, _shift_masks(h, w)]
    in_specs = [pl.BlockSpec((1, cin, m_in), lambda i: (i, 0, 0)),
                full(9, co, cin), full(co, 1), full(9, m_in)]
    if stride != 1:
        inputs.append(_downsample_matrix(h, w))
        in_specs.append(full(m_in, m_out))
    if has_conv2:
        inputs += [w2, b2, _shift_masks(ho, wo)]
        in_specs += [full(9, co, co), full(co, 1), full(9, m_out)]
    if has_sc:
        inputs += [wsc, bsc]
        in_specs += [full(co, cin), full(co, 1)]
    if with_head:
        nc = wl.shape[0]
        inputs += [wl, bl]
        in_specs += [full(nc, co), full(nc, 1)]
        out_shape = jax.ShapeDtypeStruct((nc, n), jnp.float32)
        out_spec = full(nc, n)            # resident; columns written per step
        semantics = ("arbitrary",)
    else:
        out_shape = jax.ShapeDtypeStruct((n, co, m_out), ACT_DTYPE)
        out_spec = pl.BlockSpec((1, co, m_out), lambda i: (i, 0, 0))
        semantics = ("parallel",)

    kernel = _make_fused_block_kernel(
        stride=stride, has_conv2=has_conv2, has_sc=has_sc, with_head=with_head,
        w_in=w, w_out=wo, m_in=m_in, m_out=m_out,
        roll_np_like=roll_is_np_like())

    return pl.pallas_call(
        kernel,
        out_shape=out_shape,
        grid=(n,),
        in_specs=in_specs,
        out_specs=out_spec,
        compiler_params=pltpu.CompilerParams(
            dimension_semantics=semantics, vmem_limit_bytes=VMEM_LIMIT),
    )(*inputs)


# ----------------------------------------------------------------------------
# Plain-JAX glue (runs fused under the single jax.jit): BN fold, layout prep
# ----------------------------------------------------------------------------
def _fold_bn(p):
    """Fold inference-mode BN into the conv: returns (HWIO bf16 weight, f32 bias)."""
    scale = p['gamma'] / jnp.sqrt(p['var'] + EPS)
    bias = (p['beta'] - p['mean'] * scale).astype(jnp.float32)
    wf = (p['w'] * scale[None, None, None, :]).astype(ACT_DTYPE)
    return wf, bias


def _taps(w_hwio):
    """(k, k, Cin, Co) -> (k*k, Co, Cin) tap-major weight matrices."""
    kh, kw, ci, co = w_hwio.shape
    return jnp.transpose(w_hwio, (0, 1, 3, 2)).reshape(kh * kw, co, ci)


def resnet_forward(params, x_nchw, *, strides):
    n, cin, h, w = x_nchw.shape
    x = x_nchw.astype(ACT_DTYPE).reshape(n, cin, h * w)

    # Stem: conv3x3 + BN + ReLU  (pad Cin 3 -> 8 so the MXU operand is aligned)
    ws, bs = _fold_bn(params['stem'])
    cin_p = _round_up(cin, 8)
    if cin_p != cin:
        x = jnp.pad(x, ((0, 0), (0, cin_p - cin), (0, 0)))
        ws = jnp.pad(ws, ((0, 0), (0, 0), (0, cin_p - cin), (0, 0)))
    x = fused_block(x, w1=_taps(ws), b1=bs[:, None], h=h, w=w, stride=1)

    blocks = [blk for stage in params['layers'] for blk in stage]
    wl, bl = params['linear']                      # stored (in_features, nc)
    wl_t = jnp.transpose(wl).astype(jnp.float32)   # (nc, C_last)
    bl2 = bl[:, None].astype(jnp.float32)

    for i, (blk, s) in enumerate(zip(blocks, strides)):
        w1f, b1f = _fold_bn(blk['conv1'])
        w2f, b2f = _fold_bn(blk['conv2'])
        blk_kwargs = dict(w1=_taps(w1f), b1=b1f[:, None],
                          w2=_taps(w2f), b2=b2f[:, None],
                          h=h, w=w, stride=s)
        if 'shortcut' in blk:
            wscf, bscf = _fold_bn(blk['shortcut'])
            blk_kwargs.update(wsc=jnp.transpose(wscf[0, 0]), bsc=bscf[:, None])
        if i == len(blocks) - 1:                   # fuse GAP + linear head
            blk_kwargs.update(wl=wl_t, bl=bl2)
        x = fused_block(x, **blk_kwargs)
        h = (h - 1) // s + 1
        w = (w - 1) // s + 1

    return jnp.transpose(x)                        # (nc, N) -> (N, nc)


# ----------------------------------------------------------------------------
# Pure-XLA f32 reference (mirrors the kernel's bf16 quantization points)
# ----------------------------------------------------------------------------
def reference_forward(params, x_nchw, *, strides):
    f32 = jnp.float32

    def conv(xa, wf, s, pad):
        return jax.lax.conv_general_dilated(
            xa, wf.astype(f32), (s, s), ((pad, pad), (pad, pad)),
            dimension_numbers=('NCHW', 'HWIO', 'NCHW'))

    def rebf(xa):                                  # mirror bf16 HBM storage
        return xa.astype(ACT_DTYPE).astype(f32)

    x = rebf(x_nchw.astype(f32))
    ws, bs = _fold_bn(params['stem'])
    out = rebf(jax.nn.relu(conv(x, ws, 1, 1) + bs[None, :, None, None]))
    blocks = [blk for stage in params['layers'] for blk in stage]
    for i, (blk, s) in enumerate(zip(blocks, strides)):
        w1f, b1f = _fold_bn(blk['conv1'])
        w2f, b2f = _fold_bn(blk['conv2'])
        h1 = rebf(jax.nn.relu(conv(out, w1f, s, 1) + b1f[None, :, None, None]))
        h2 = conv(h1, w2f, 1, 1) + b2f[None, :, None, None]
        if 'shortcut' in blk:
            wscf, bscf = _fold_bn(blk['shortcut'])
            sc = conv(out, wscf, s, 0) + bscf[None, :, None, None]
        else:
            sc = out
        out = jax.nn.relu(h2 + sc)
        if i != len(blocks) - 1:
            out = rebf(out)
    pooled = jnp.mean(out, axis=(2, 3))
    wl, bl = params['linear']
    return jnp.dot(pooled, wl.astype(f32),
                   precision=jax.lax.Precision.HIGHEST) + bl


# ----------------------------------------------------------------------------
# Parameter init (matches the PyTorch module's structure / kaiming init)
# ----------------------------------------------------------------------------
def kaiming_normal(key, shape, fan_in):
    return (2.0 / fan_in) ** 0.5 * jax.random.normal(key, shape, jnp.float32)


def init_conv_bn(key, k, ci, co):
    return dict(w=kaiming_normal(key, (k, k, ci, co), fan_in=ci * k * k),
                gamma=jnp.ones((co,), jnp.float32),
                beta=jnp.zeros((co,), jnp.float32),
                mean=jnp.zeros((co,), jnp.float32),
                var=jnp.ones((co,), jnp.float32))


def init_resnet(key, num_blocks=(1, 1, 1), num_classes=10):
    keys = iter(jax.random.split(key, 128))
    params = {'stem': init_conv_bn(next(keys), 3, 3, 16)}
    in_planes, layers, strides = 16, [], []
    for planes, nb, stage_stride in zip((16, 32, 64), num_blocks, (1, 2, 2)):
        stage = []
        for s in [stage_stride] + [1] * (nb - 1):
            blk = dict(conv1=init_conv_bn(next(keys), 3, in_planes, planes),
                       conv2=init_conv_bn(next(keys), 3, planes, planes))
            if s != 1 or in_planes != planes:
                blk['shortcut'] = init_conv_bn(next(keys), 1, in_planes, planes)
            stage.append(blk)
            strides.append(s)
            in_planes = planes
        layers.append(stage)
    params['layers'] = layers
    k1, k2 = jax.random.split(next(keys))
    wlin = kaiming_normal(k1, (64, num_classes), fan_in=64)   # stored (in, out)
    bound = 1.0 / (64 ** 0.5)
    blin = jax.random.uniform(k2, (num_classes,), jnp.float32, -bound, bound)
    params['linear'] = (wlin, blin)
    return params, tuple(strides)


if __name__ == "__main__":
    roll_is_np_like()              # prime the roll-direction probe (outside jit)

    key = jax.random.PRNGKey(0)
    kp, kx = jax.random.split(key)
    params, strides = init_resnet(kp, num_blocks=(1, 1, 1), num_classes=10)
    x = jax.random.normal(kx, (2, 3, 16, 16), dtype=jnp.float32)   # NCHW

    fwd = jax.jit(functools.partial(resnet_forward, strides=strides))
    out = jax.block_until_ready(fwd(params, x))
    assert out.shape == (2, 10) and bool(jnp.all(jnp.isfinite(out)))

    ref = jax.jit(functools.partial(reference_forward, strides=strides))(params, x)
    ref = jax.block_until_ready(ref)
    err = float(jnp.max(jnp.abs(out - ref)))
    scale = max(1.0, float(jnp.max(jnp.abs(ref))))
    assert err <= 2e-2 * scale, f"mismatch vs reference: max abs err {err}"

    print("KERNEL_OK")
</pallas_src>

<mosaic_0001>
module attributes {stable_mosaic.version = 11 : i64} {
  func.func @_roll_probe_kernel(%arg0: memref<8x128xf32, #tpu.memory_space<vmem>>, %arg1: memref<8x128xf32, #tpu.memory_space<vmem>>) attributes {dimension_semantics = [], scalar_prefetch = 0 : i64, scratch_operands = 0 : i64, tpu.core_type = #tpu.core_type<tc>} {
    %c0 = arith.constant 0 : index
    %c0_0 = arith.constant 0 : index
    %0 = vector.load %arg0[%c0, %c0_0] : memref<8x128xf32, #tpu.memory_space<vmem>>, vector<8x128xf32>
    %c1_i32 = arith.constant 1 : i32
    %1 = tpu.dynamic_rotate %0 by %c1_i32 dim 1 : vector<8x128xf32>, i32 -> vector<8x128xf32>
    %c0_1 = arith.constant 0 : index
    %c0_2 = arith.constant 0 : index
    %2 = vector.load %arg1[%c0_1, %c0_2] : memref<8x128xf32, #tpu.memory_space<vmem>>, vector<8x128xf32>
    tpu.vector_store %arg1[%c0_1, %c0_2], %1 {strides = array<i32>} : memref<8x128xf32, #tpu.memory_space<vmem>>, vector<8x128xf32>,
    return
  }
}

</mosaic_0001>

<bundles_post_ra>
// kernel: tpu_custom_call.1
= control target key start
LH: loop header
LB: loop body
LE: loop exit
PB: predicated region body
PF: predicated region fallthrough
CT: control target
= control target key end

     0   :  { %6 = vsyncpa [#allocation3], 0  ;;  %s128_s0 = inlined_call_operand.hbm [shape: f32[8,128], index: 0, kind: input, shape index: {}]   ;;  %s129_s1 = inlined_call_operand.hbm [shape: f32[8,128], index: 1, kind: output, shape index: {}]  }
   0x1   :  { %7 = vsyncpa [#allocation4], 0  ;;  %s91_s6 = smov [#allocation2]   ;;  %s43_s10 = scalar_lea.hbm %s128_s0, 128 }
   0x2   :  { %s14_s7 = sshll.u32 %s91_s6, 4  ;;  %p44_p0 = scmp.ne.s32.totalorder %s128_s0, %s43_s10  ;;  %s15_s7 = int_to_ptr.vmem [resolvable:$true] %s14_s7 }
   0x3   :  { %p47_p1 = scmp.lt.u32.totalorder %s43_s10, %s128_s0 }
   0x5   :  { %p49_p2 = pnand %p47_p1, %p44_p0 }
   0x7   :  { %52 = shalt.err (!%p49_p2)
}
   0x8   :  { %s53_s15 = scalar_lea.vmem %s15_s7, 128  ;;  %p58_p4 = scmp.lt.s32.totalorder %s15_s7, %s15_s7 }
   0x9   :  { %p54_p3 = scmp.ne.s32.totalorder %s15_s7, %s53_s15  ;;  %p59_p5 = scmp.lt.s32.totalorder %s53_s15, %s53_s15 }
   0xb   :  { %p60_p6 = por %p59_p5, %p58_p4 }
   0xd   :  { %p61_p7 = pnand %p60_p6, %p54_p3 }
   0xf   :  { %64 = shalt.err (!%p61_p7)
}
  0x10   :  { %17 = dma.hbm_to_vmem [thread:$0]  %s128_s0, 128, %s15_s7, [#allocation3]  }
  0x11   :  { %87 = dma.done.wait [#allocation3], 128  }
  0x12   :  { %88 = vsyncadd [#allocation3], 4294967168  ;;  %v21_v0 = vld [vmem:[#allocation2] sm:$0xff]  ;;  %s92_s18 = smov 1   ;;  %s93_s19 = smov [#allocation5]  }
  0x13   :  { %22 = vrot.lane.b32.xlu0 %v21_v0, %s92_s18  ;;  %s31_s20 = sshll.u32 %s93_s19, 4  ;;  %s32_s20 = int_to_ptr.vmem [resolvable:$true] %s31_s20 }
  0x14   :  { %s65_s21 = scalar_lea.vmem %s32_s20, 128  ;;  %p70_p9 = scmp.lt.s32.totalorder %s32_s20, %s32_s20 }
  0x15   :  { %p66_p8 = scmp.ne.s32.totalorder %s32_s20, %s65_s21  ;;  %p71_p10 = scmp.lt.s32.totalorder %s65_s21, %s65_s21 }
  0x17   :  { %p72_p11 = por %p71_p10, %p70_p9 }
  0x19   :  { %p73_p12 = pnand %p72_p11, %p66_p8 }
  0x85   :  { %v23_v1 = vpop.permute.xlu0 %22 }
  0x86   :  { %24 = vst [vmem:[#allocation5] sm:$0xff] %v23_v1 }
  0x87   :  { %76 = shalt.err (!%p73_p12)
}
  0x88   :  { %s77_s0 = scalar_lea.hbm %s129_s1, 128 }
  0x89   :  { %p78_p13 = scmp.ne.s32.totalorder %s129_s1, %s77_s0  ;;  %p81_p0 = scmp.lt.u32.totalorder %s77_s0, %s129_s1 }
  0x8b   :  { %p83_p1 = pnand %p81_p0, %p78_p13 }
  0x8d   :  { %86 = shalt.err (!%p83_p1)
}
  0x8e   :  { %34 = dma.vmem_to_hbm [thread:$0]  %s32_s20, 128, %s129_s1, [#allocation4]  }
  0x8f   :  { %89 = dma.done.wait [#allocation4], 128  }
  0x90   :  { %90 = vsyncadd [#allocation4], 4294967168 }
  0x91   :  { %38 = vsyncpa [#allocation3], 1 }
  0x92   :  { %39 = vsyncpa [#allocation4], 1 }

</bundles_post_ra>
